<compile_context>
chip_gen: v7x
topology: tpu7x:2x2x1
jax: 0.10.0
libtpu: 0.0.40
codegen_flags: <defaults>
</compile_context>

<pallas_src>
import jax
import jax.numpy as jnp
from jax import lax
from jax.experimental import pallas as pl
from jax.experimental.pallas import tpu as pltpu

_NEG_INF = -1.0e9


def _rpe_kernel(emb_ref, out_ref):
    # emb_ref: (max_position,) f32 in SMEM (whole table, scalar reads)
    # out_ref: (tm, tn)        f32 VMEM tile of the output
    tm, tn = out_ref.shape
    max_position = emb_ref.shape[0]

    i0 = pl.program_id(0) * tm
    j0 = pl.program_id(1) * tn
    d0 = i0 - j0                               # scalar fold of both offsets

    # Does this tile intersect the band 1 <= i - j <= max_position - 1 ?
    diff_max = d0 + (tm - 1)                   # max of i - j over the tile
    diff_min = d0 - (tn - 1)                   # min of i - j over the tile
    band = (diff_max >= 1) & (diff_min <= max_position - 1)

    @pl.when(jnp.logical_not(band))
    def _():
        # Entire tile is masked: pure -1e9 fill (memset at store bandwidth).
        out_ref[...] = jnp.full((tm, tn), jnp.float32(_NEG_INF), jnp.float32)

    @pl.when(band)
    def _():
        # diff = i - j, built from one scalar + two iotas (hoisted, not in loop).
        diff = (d0
                + lax.broadcasted_iota(jnp.int32, (tm, tn), 0)
                - lax.broadcasted_iota(jnp.int32, (tm, tn), 1))

        # Start from the masked value; paint in the P-1 valid sub-diagonals.
        # diff <= 0 and diff >= max_position stay at -1e9 automatically.
        acc = jnp.full((tm, tn), jnp.float32(_NEG_INF), jnp.float32)
        for p in range(1, max_position):       # static loop, P is tiny
            acc = jnp.where(diff == p, emb_ref[p - 1], acc)
        out_ref[...] = acc


def _round_up(x: int, m: int) -> int:
    return (x + m - 1) // m * m


def rpe_forward(emb_weight: jax.Array, seq: int, *,
                tile_m: int = 512, tile_n: int = 1024) -> jax.Array:
    """emb_weight: (max_position, 1) f32. Returns (seq, seq, 1) f32."""
    max_position = emb_weight.shape[0]
    emb_flat = emb_weight.reshape(max_position).astype(jnp.float32)

    # Tile sizes: sublane dim a multiple of 8, lane dim a multiple of 128
    # (block_shape rule), clamped so tiny problems don't over-allocate.
    # No padding: the output is exactly (seq, seq); ragged edge blocks are
    # handled by Pallas masked stores.
    tm = min(tile_m, _round_up(seq, 8))
    tn = min(tile_n, _round_up(seq, 128))
    # Keep >= 2 blocks along the (parallel) row axis when there is enough
    # work so both v7x TensorCores get tiles; neutral on v5e/v6e.
    if seq > 8 and pl.cdiv(seq, tm) == 1 and pl.cdiv(seq, tn) == 1:
        tm = max(8, _round_up(pl.cdiv(seq, 2), 8))
    grid = (pl.cdiv(seq, tm), pl.cdiv(seq, tn))

    out = pl.pallas_call(
        _rpe_kernel,
        out_shape=jax.ShapeDtypeStruct((seq, seq), jnp.float32),
        grid=grid,
        in_specs=[pl.BlockSpec(memory_space=pltpu.MemorySpace.SMEM)],
        out_specs=pl.BlockSpec((tm, tn), lambda i, j: (i, j)),
        compiler_params=pltpu.CompilerParams(
            dimension_semantics=("parallel", "parallel")),
        cost_estimate=pl.CostEstimate(
            flops=0,
            transcendentals=0,
            bytes_accessed=4 * seq * seq + 4 * max_position),
    )(emb_flat)

    # Trailing reshape to match the module's (seq, seq, 1) output — free.
    return out.reshape(seq, seq, 1)


def _reference(emb_weight, seq):
    """Pure-JAX reference mirroring the PyTorch module."""
    max_position = emb_weight.shape[0]
    i = jnp.arange(seq)[:, None]
    j = jnp.arange(seq)[None, :]
    dist = (j - i).astype(jnp.float32)
    idx = (-jnp.clip(dist, -max_position, -1.0)).astype(jnp.int32) - 1
    mask = (jnp.abs(dist) >= max_position) | (dist >= 0)
    vals = emb_weight[idx, 0]
    out = jnp.where(mask, jnp.float32(_NEG_INF), vals)
    return out.reshape(seq, seq, 1)


if __name__ == "__main__":
    max_position = 6
    key = jax.random.PRNGKey(0)
    emb_weight = jax.random.normal(key, (max_position, 1), dtype=jnp.float32)

    # Small shape implied by the module.
    seq = 8
    out = jax.block_until_ready(rpe_forward(emb_weight, seq))
    ref = _reference(emb_weight, seq)
    assert out.shape == (seq, seq, 1), out.shape
    assert jnp.allclose(out, ref, atol=1e-6), "mismatch vs reference (seq=8)"

    # Larger check exercising multi-tile grid, ragged (masked) edge blocks,
    # and both the band and pure-fill paths.
    seq2 = 600
    out2 = jax.block_until_ready(rpe_forward(emb_weight, seq2))
    ref2 = _reference(emb_weight, seq2)
    assert out2.shape == (seq2, seq2, 1), out2.shape
    assert jnp.allclose(out2, ref2, atol=1e-6), "mismatch vs reference (seq=600)"

    print("KERNEL_OK")
</pallas_src>

<mosaic_0001>
module attributes {stable_mosaic.version = 11 : i64} {
  func.func @_rpe_kernel(%arg0: i32, %arg1: i32, %arg2: memref<6xf32, #tpu.memory_space<smem>>, %arg3: memref<8x128xf32, #tpu.memory_space<vmem>>) attributes {dimension_semantics = [#tpu.dimension_semantics<parallel>, #tpu.dimension_semantics<parallel>], iteration_bounds = array<i64: 1, 1>, scalar_prefetch = 0 : i64, scratch_operands = 0 : i64, tpu.core_type = #tpu.core_type<tc>, window_params = [{transform_indices = @transform_0, window_bounds = array<i64: 6>}, {transform_indices = @transform_1, window_bounds = array<i64: 8, 128>}]} {
    %c8_i32 = arith.constant 8 : i32
    %0 = arith.muli %arg0, %c8_i32 : i32
    %c128_i32 = arith.constant 128 : i32
    %1 = arith.muli %arg1, %c128_i32 : i32
    %2 = arith.subi %0, %1 : i32
    %c7_i32 = arith.constant 7 : i32
    %3 = arith.addi %2, %c7_i32 : i32
    %c127_i32 = arith.constant 127 : i32
    %4 = arith.subi %2, %c127_i32 : i32
    %c1_i32 = arith.constant 1 : i32
    %5 = arith.cmpi sge, %3, %c1_i32 : i32
    %c5_i32 = arith.constant 5 : i32
    %6 = arith.cmpi sle, %4, %c5_i32 : i32
    %7 = arith.andi %5, %6 : i1
    %true = arith.constant true
    %8 = arith.xori %7, %true : i1
    %9 = arith.extui %8 : i1 to i32
    %c0_i32 = arith.constant 0 : i32
    %10 = arith.cmpi ne, %9, %c0_i32 : i32
    scf.if %10 {
      %cst = arith.constant -1.000000e+09 : f32
      %13 = vector.broadcast %cst : f32 to vector<8x128xf32>
      %c0 = arith.constant 0 : index
      %c0_1 = arith.constant 0 : index
      %14 = vector.load %arg3[%c0, %c0_1] : memref<8x128xf32, #tpu.memory_space<vmem>>, vector<8x128xf32>
      tpu.vector_store %arg3[%c0, %c0_1], %13 {strides = array<i32>} : memref<8x128xf32, #tpu.memory_space<vmem>>, vector<8x128xf32>,
    } else {
    }
    %11 = arith.extui %7 : i1 to i32
    %c0_i32_0 = arith.constant 0 : i32
    %12 = arith.cmpi ne, %11, %c0_i32_0 : i32
    scf.if %12 {
      %13 = tpu.iota {dimensions = array<i32: 0>} : vector<8x128xi32>
      %14 = vector.broadcast %2 : i32 to vector<8x128xi32>
      %15 = arith.addi %14, %13 : vector<8x128xi32>
      %16 = tpu.iota {dimensions = array<i32: 1>} : vector<8x128xi32>
      %17 = arith.subi %15, %16 : vector<8x128xi32>
      %cst = arith.constant -1.000000e+09 : f32
      %18 = vector.broadcast %cst : f32 to vector<8x128xf32>
      %c1_i32_1 = arith.constant 1 : i32
      %19 = vector.broadcast %c1_i32_1 : i32 to vector<8x128xi32>
      %20 = arith.cmpi eq, %17, %19 : vector<8x128xi32>
      %c0 = arith.constant 0 : index
      %21 = memref.load %arg2[%c0] : memref<6xf32, #tpu.memory_space<smem>>
      %22 = vector.broadcast %21 : f32 to vector<8x128xf32>
      %23 = arith.select %20, %22, %18 : vector<8x128xi1>, vector<8x128xf32>
      %c2_i32 = arith.constant 2 : i32
      %24 = vector.broadcast %c2_i32 : i32 to vector<8x128xi32>
      %25 = arith.cmpi eq, %17, %24 : vector<8x128xi32>
      %c1 = arith.constant 1 : index
      %26 = memref.load %arg2[%c1] : memref<6xf32, #tpu.memory_space<smem>>
      %27 = vector.broadcast %26 : f32 to vector<8x128xf32>
      %28 = arith.select %25, %27, %23 : vector<8x128xi1>, vector<8x128xf32>
      %c3_i32 = arith.constant 3 : i32
      %29 = vector.broadcast %c3_i32 : i32 to vector<8x128xi32>
      %30 = arith.cmpi eq, %17, %29 : vector<8x128xi32>
      %c2 = arith.constant 2 : index
      %31 = memref.load %arg2[%c2] : memref<6xf32, #tpu.memory_space<smem>>
      %32 = vector.broadcast %31 : f32 to vector<8x128xf32>
      %33 = arith.select %30, %32, %28 : vector<8x128xi1>, vector<8x128xf32>
      %c4_i32 = arith.constant 4 : i32
      %34 = vector.broadcast %c4_i32 : i32 to vector<8x128xi32>
      %35 = arith.cmpi eq, %17, %34 : vector<8x128xi32>
      %c3 = arith.constant 3 : index
      %36 = memref.load %arg2[%c3] : memref<6xf32, #tpu.memory_space<smem>>
      %37 = vector.broadcast %36 : f32 to vector<8x128xf32>
      %38 = arith.select %35, %37, %33 : vector<8x128xi1>, vector<8x128xf32>
      %c5_i32_2 = arith.constant 5 : i32
      %39 = vector.broadcast %c5_i32_2 : i32 to vector<8x128xi32>
      %40 = arith.cmpi eq, %17, %39 : vector<8x128xi32>
      %c4 = arith.constant 4 : index
      %41 = memref.load %arg2[%c4] : memref<6xf32, #tpu.memory_space<smem>>
      %42 = vector.broadcast %41 : f32 to vector<8x128xf32>
      %43 = arith.select %40, %42, %38 : vector<8x128xi1>, vector<8x128xf32>
      %c0_3 = arith.constant 0 : index
      %c0_4 = arith.constant 0 : index
      %44 = vector.load %arg3[%c0_3, %c0_4] : memref<8x128xf32, #tpu.memory_space<vmem>>, vector<8x128xf32>
      tpu.vector_store %arg3[%c0_3, %c0_4], %43 {strides = array<i32>} : memref<8x128xf32, #tpu.memory_space<vmem>>, vector<8x128xf32>,
    } else {
    }
    return
  }
  func.func @transform_0(%arg0: i32, %arg1: i32) -> i32 {
    %c0_i32 = arith.constant 0 : i32
    %c0_i32_0 = arith.constant 0 : i32
    return %c0_i32 : i32
  }
  func.func @transform_1(%arg0: i32, %arg1: i32) -> (i32, i32) {
    %c0_i32 = arith.constant 0 : i32
    return %arg0, %arg1 : i32, i32
  }
}

</mosaic_0001>

<bundles_post_ra>
// kernel: tpu_custom_call.1
= control target key start
LH: loop header
LB: loop body
LE: loop exit
PB: predicated region body
PF: predicated region fallthrough
CT: control target
= control target key end

     0   :  { %6 = vsyncpa [#allocation4], 0  ;;  %s156_s0 = inlined_call_operand.hbm [shape: f32[6], index: 0, kind: input, shape index: {}]   ;;  %s157_s1 = inlined_call_operand.hbm [shape: f32[8,8], index: 1, kind: output, shape index: {}]  }
   0x1   :  { %7 = vsyncpa [#allocation3], 0  ;;  %s84_s8 = scalar_lea.hbm %s156_s0, 16 }
   0x2   :  { %p85_p0 = scmp.ne.s32.totalorder %s156_s0, %s84_s8  ;;  %p88_p1 = scmp.lt.u32.totalorder %s84_s8, %s156_s0 }
   0x4   :  { %p90_p2 = pnand %p88_p1, %p85_p0 }
   0x6   :  { %93 = shalt.err (!%p90_p2)
}
   0x7   :  { %s120_s13 = smov [#allocation2]  }
   0x8   :  { %15 = dma.hbm_to_smem %s156_s0, 16, %s120_s13, [#allocation4]  }
   0x9   :  { %116 = dma.done.wait [#allocation4], 16  }
   0xa   :  { %117 = vsyncadd [#allocation4], 4294967280 }
   0xb   :  { %19 = sfence }
   0xc   :  { %v31_v0 = vlaneseq  ;;  %s39_s16 = sld [smem:[#allocation2]]  ;;  %s78_s17 = sld [smem:[#allocation2 + $0x1]] }
   0xd   :  { %s79_s18 = sld [smem:[#allocation2 + $0x2]]  ;;  %s80_s19 = sld [smem:[#allocation2 + $0x3]] }
   0xe   :  { %v32_v1 = vshrl.u32 %v31_v0, 7  ;;  %v36_v2 = vand.u32 127, %v31_v0  ;;  %s81_s20 = sld [smem:[#allocation2 + $0x4]]  ;;  %s121_s0 = smov [#allocation5]  }
   0xf   :  { %s69_s21 = sshll.u32 %s121_s0, 4  ;;  %s70_s21 = int_to_ptr.vmem [resolvable:$true] %s69_s21 }
  0x10   :  { %v37_v3 = vsub.s32 %v32_v1, %v36_v2  ;;  %s94_s22 = scalar_lea.vmem %s70_s21, 128  ;;  %p99_p4 = scmp.lt.s32.totalorder %s70_s21, %s70_s21 }
  0x11   :  { %p95_p3 = scmp.ne.s32.totalorder %s70_s21, %s94_s22  ;;  %p100_p5 = scmp.lt.s32.totalorder %s94_s22, %s94_s22 }
  0x12   :  { %vm38_vm0 = vcmp.eq.s32.totalorder %v37_v3, 1  ;;  %v40_v4 = vstv %s39_s16  ;;  %vm42_vm1 = vcmp.eq.s32.totalorder %v37_v3, 2  ;;  %v44_v5 = vstv %s78_s17 }
  0x13   :  { %v41_v6 = vsel %vm38_vm0, %v40_v4, -1e+09  ;;  %vm46_vm2 = vcmp.eq.s32.totalorder %v37_v3, 3  ;;  %v48_v7 = vstv %s79_s18  ;;  %vm50_vm3 = vcmp.eq.s32.totalorder %v37_v3, 4  ;;  %p101_p6 = por %p100_p5, %p99_p4 }
  0x14   :  { %v45_v8 = vsel %vm42_vm1, %v44_v5, %v41_v6  ;;  %v52_v9 = vstv %s80_s19  ;;  %vm54_vm4 = vcmp.eq.s32.totalorder %v37_v3, 5  ;;  %v56_v10 = vstv %s81_s20 }
  0x15   :  { %v49_v11 = vsel %vm46_vm2, %v48_v7, %v45_v8  ;;  %p102_p7 = pnand %p101_p6, %p95_p3 }
  0x16   :  { %v53_v12 = vsel %vm50_vm3, %v52_v9, %v49_v11 }
  0x17   :  { %v57_v13 = vsel %vm54_vm4, %v56_v10, %v53_v12 }
  0x18   :  { %58 = vst [vmem:[#allocation5] sm:$0xff] %v57_v13 }
  0x19   :  { %105 = shalt.err (!%p102_p7)
}
  0x1a   :  { %s106_s25 = scalar_lea.hbm %s157_s1, 128 }
  0x1b   :  { %p107_p8 = scmp.ne.s32.totalorder %s157_s1, %s106_s25  ;;  %p110_p9 = scmp.lt.u32.totalorder %s106_s25, %s157_s1 }
  0x1d   :  { %p112_p10 = pnand %p110_p9, %p107_p8 }
  0x1f   :  { %115 = shalt.err (!%p112_p10)
}
  0x20   :  { %72 = dma.vmem_to_hbm [thread:$0]  %s70_s21, 128, %s157_s1, [#allocation3]  }
  0x21   :  { %118 = dma.done.wait [#allocation3], 128  }
  0x22   :  { %119 = vsyncadd [#allocation3], 4294967168 }
  0x23   :  { %76 = vsyncpa [#allocation3], 1 }
  0x24   :  { %77 = vsyncpa [#allocation4], 1 }

</bundles_post_ra>
